<compile_context>
chip_gen: v6e
topology: v6e:2x2x1
jax: 0.10.0
libtpu: 0.0.40
codegen_flags: <defaults>
</compile_context>

<pallas_src>
import functools
import math

import jax
import jax.numpy as jnp
from jax.experimental import pallas as pl
from jax.experimental.pallas import tpu as pltpu


# ----------------------------------------------------------------------------
# Fused Pallas kernel: conv+relu+maxpool -> QKV proj -> attention -> out proj
# -> add+LN -> FFN -> add+LN, one grid step per batch element.
# ----------------------------------------------------------------------------
def _encoder_layer_kernel(vt_ref, cw_ref, cb_ref, wqk_ref, bqk_ref,
                          wv_ref, bv_ref, wo_ref, bo_ref, g1_ref, be1_ref,
                          w1_ref, fb1_ref, w2_ref, fb2_ref, g2_ref, be2_ref,
                          out_ref, attn_ref, *,
                          n_head, d_k, d_v, d_model, n_pool, eps):
    v_in = vt_ref[0]                                       # (M, window), f32

    # --- Conv2d(1, d_model, (local,1)) + bias + ReLU + AdaptiveMaxPool over time ---
    # cw_ref is a banded (window, n_pool*d_model) matrix built from the conv weights,
    # so the whole temporal conv is one lane-dense matmul (no im2col of activations).
    conv_flat = jnp.dot(v_in, cw_ref[...], preferred_element_type=jnp.float32)
    pooled = conv_flat[:, 0:d_model]
    for t in range(1, n_pool):
        pooled = jnp.maximum(pooled, conv_flat[:, t * d_model:(t + 1) * d_model])
    # max_t(relu(z_t + b)) == relu(max_t(z_t) + b)  (monotone), so bias+relu once.
    x_emb = jnp.maximum(pooled + cb_ref[...], 0.0)         # (M, d_model)

    # --- fused Q,K projection (wq | wk concatenated) and V projection ---
    qk = jnp.dot(x_emb, wqk_ref[...], preferred_element_type=jnp.float32) + bqk_ref[...]
    vp = jnp.dot(v_in, wv_ref[...], preferred_element_type=jnp.float32) + bv_ref[...]

    hk = n_head * d_k
    inv_temp = 1.0 / math.sqrt(d_k)

    # --- scaled dot-product attention, per-head static column slices (no transposes) ---
    head_outs = []
    for h in range(n_head):
        qh = qk[:, h * d_k:(h + 1) * d_k]                  # (M, dk)
        kh = qk[:, hk + h * d_k: hk + (h + 1) * d_k]       # (M, dk)
        vh = vp[:, h * d_v:(h + 1) * d_v]                  # (M, dv)
        s = jax.lax.dot_general(qh, kh, (((1,), (1,)), ((), ())),
                                preferred_element_type=jnp.float32) * inv_temp
        s = s - jnp.max(s, axis=-1, keepdims=True)
        p = jnp.exp(s)
        p = p * pl.reciprocal(jnp.sum(p, axis=-1, keepdims=True), approx=True)
        attn_ref[0, h] = p.astype(attn_ref.dtype)
        head_outs.append(jnp.dot(p, vh, preferred_element_type=jnp.float32))
    o = jnp.concatenate(head_outs, axis=-1)                # (M, H*dv)

    # --- output projection + residual(v) + LayerNorm(window) ---
    o = jnp.dot(o, wo_ref[...], preferred_element_type=jnp.float32) + bo_ref[...]
    y = o + v_in
    mu = jnp.mean(y, axis=-1, keepdims=True)
    var = jnp.mean((y - mu) ** 2, axis=-1, keepdims=True)
    attn_out = (y - mu) * jax.lax.rsqrt(var + eps) * g1_ref[...] + be1_ref[...]

    # --- PositionwiseFeedForward: 1x1 conv -> ReLU -> 1x1 conv, residual + LayerNorm ---
    h1 = jnp.maximum(
        jnp.dot(attn_out, w1_ref[...], preferred_element_type=jnp.float32) + fb1_ref[...], 0.0)
    o2 = jnp.dot(h1, w2_ref[...], preferred_element_type=jnp.float32) + fb2_ref[...]
    y2 = o2 + attn_out
    mu2 = jnp.mean(y2, axis=-1, keepdims=True)
    var2 = jnp.mean((y2 - mu2) ** 2, axis=-1, keepdims=True)
    out_ref[0] = ((y2 - mu2) * jax.lax.rsqrt(var2 + eps) * g2_ref[...] + be2_ref[...]
                  ).astype(out_ref.dtype)


# ----------------------------------------------------------------------------
# JAX glue: weight-only preprocessing + pallas_call wrapper
# ----------------------------------------------------------------------------
def _banded_conv_matrix(conv_w, window, local):
    """conv_w: (local, d_model) -> (window, n_pool*d_model) banded matrix B with
    B[t, tp*d_model + c] = conv_w[t - tp, c] for 0 <= t - tp < local, else 0, so that
    (v_in @ B)[m, tp*d_model + c] == Conv2d output at (channel c, time tp, variable m)."""
    n_pool = window - local + 1
    blocks = []
    for tp in range(n_pool):
        blk = jnp.zeros((window, conv_w.shape[1]), conv_w.dtype)
        blk = blk.at[tp:tp + local, :].set(conv_w)
        blocks.append(blk)
    return jnp.concatenate(blocks, axis=1)


def encoder_layer_forward(enc_input, params, *, n_head, d_k, d_v, local=4, eps=1e-5):
    """enc_input: (B, window, n_multiv+1) -> (enc_output (B, n_multiv+1, window),
                                              enc_slf_attn (B, n_head, n_multiv+1, n_multiv+1))."""
    B, window, M = enc_input.shape
    d_model = params["conv_w"].shape[1]
    n_pool = window - local + 1
    hk = n_head * d_k

    # Weight-only preprocessing (fused/hoisted by XLA under jit; negligible).
    vt = jnp.transpose(enc_input, (0, 2, 1))                       # (B, M, window)
    conv_mat = _banded_conv_matrix(params["conv_w"], window, local)
    wqk = jnp.concatenate([params["wq"], params["wk"]], axis=1)    # (d_model, 2*hk)
    bqk = jnp.concatenate([params["bq"], params["bk"]]).reshape(1, 2 * hk)

    row = lambda a: a.reshape(1, -1)
    args = (
        vt, conv_mat, row(params["conv_b"]),
        wqk, bqk,
        params["wv"], row(params["bv"]),
        params["wo"], row(params["bo"]),
        row(params["ln1_g"]), row(params["ln1_b"]),
        params["w1"], row(params["b1"]),
        params["w2"], row(params["b2"]),
        row(params["ln2_g"]), row(params["ln2_b"]),
    )

    def batch_spec(shape):
        nd = len(shape)
        return pl.BlockSpec((1,) + tuple(shape[1:]),
                            lambda i, _nd=nd: (i,) + (0,) * (_nd - 1))

    def full_spec(a):
        nd = a.ndim
        return pl.BlockSpec(tuple(a.shape), lambda i, _nd=nd: (0,) * _nd)

    in_specs = [batch_spec(vt.shape)] + [full_spec(a) for a in args[1:]]

    kernel = functools.partial(
        _encoder_layer_kernel, n_head=n_head, d_k=d_k, d_v=d_v,
        d_model=d_model, n_pool=n_pool, eps=eps)

    out_shape = (
        jax.ShapeDtypeStruct((B, M, window), jnp.float32),
        jax.ShapeDtypeStruct((B, n_head, M, M), jnp.float32),
    )
    out_specs = (
        pl.BlockSpec((1, M, window), lambda i: (i, 0, 0)),
        pl.BlockSpec((1, n_head, M, M), lambda i: (i, 0, 0, 0)),
    )

    enc_output, enc_slf_attn = pl.pallas_call(
        kernel,
        grid=(B,),
        in_specs=in_specs,
        out_specs=out_specs,
        out_shape=out_shape,
        compiler_params=pltpu.CompilerParams(dimension_semantics=("parallel",)),
    )(*args)
    return enc_output, enc_slf_attn


# ----------------------------------------------------------------------------
# Pure-JAX reference (mirrors the PyTorch forward) for a sanity check
# ----------------------------------------------------------------------------
def _layernorm(x, g, b, eps):
    mu = jnp.mean(x, axis=-1, keepdims=True)
    var = jnp.mean((x - mu) ** 2, axis=-1, keepdims=True)
    return (x - mu) * jax.lax.rsqrt(var + eps) * g + b


def encoder_layer_reference(enc_input, params, *, n_head, d_k, d_v, local=4, eps=1e-5):
    B, window, M = enc_input.shape
    n_pool = window - local + 1
    v = jnp.transpose(enc_input, (0, 2, 1))                        # (B, M, window)
    taps = jnp.stack([enc_input[:, j:j + n_pool, :] for j in range(local)], axis=-1)
    conv = jnp.einsum("btml,lc->btmc", taps, params["conv_w"]) + params["conv_b"]
    x = jnp.max(jax.nn.relu(conv), axis=1)                         # (B, M, d_model)
    q = x @ params["wq"] + params["bq"]
    k = x @ params["wk"] + params["bk"]
    vp = v @ params["wv"] + params["bv"]
    q = q.reshape(B, M, n_head, d_k).transpose(0, 2, 1, 3)
    k = k.reshape(B, M, n_head, d_k).transpose(0, 2, 1, 3)
    vh = vp.reshape(B, M, n_head, d_v).transpose(0, 2, 1, 3)
    s = jnp.einsum("bhqd,bhkd->bhqk", q, k) / math.sqrt(d_k)
    p = jax.nn.softmax(s, axis=-1)
    o = jnp.einsum("bhqk,bhkd->bhqd", p, vh).transpose(0, 2, 1, 3).reshape(B, M, n_head * d_v)
    o = _layernorm(o @ params["wo"] + params["bo"] + v, params["ln1_g"], params["ln1_b"], eps)
    h = jax.nn.relu(o @ params["w1"] + params["b1"])
    y = _layernorm(h @ params["w2"] + params["b2"] + o, params["ln2_g"], params["ln2_b"], eps)
    return y, p


# ----------------------------------------------------------------------------
# Deterministic parameter init
# ----------------------------------------------------------------------------
def init_params(key, *, d_model, window, n_head, d_k, d_v, local=4, scale=0.05):
    ks = jax.random.split(key, 7)
    f32 = jnp.float32
    rnd = lambda k, shape: (jax.random.normal(k, shape) * scale).astype(f32)
    return {
        # Conv2d(1, d_model, (local, 1)): stored as (local, d_model). Porting PyTorch
        # weights requires conv_w[j, c] = conv2.weight[c, 0, j, 0].
        "conv_w": rnd(ks[0], (local, d_model)),
        "conv_b": jnp.zeros((d_model,), f32),
        "wq": rnd(ks[1], (d_model, n_head * d_k)), "bq": jnp.zeros((n_head * d_k,), f32),
        "wk": rnd(ks[2], (d_model, n_head * d_k)), "bk": jnp.zeros((n_head * d_k,), f32),
        "wv": rnd(ks[3], (window, n_head * d_v)),  "bv": jnp.zeros((n_head * d_v,), f32),
        "wo": rnd(ks[4], (n_head * d_v, window)),  "bo": jnp.zeros((window,), f32),
        "ln1_g": jnp.ones((window,), f32), "ln1_b": jnp.zeros((window,), f32),
        "w1": rnd(ks[5], (window, 2 * window)), "b1": jnp.zeros((2 * window,), f32),
        "w2": rnd(ks[6], (2 * window, window)), "b2": jnp.zeros((window,), f32),
        "ln2_g": jnp.ones((window,), f32), "ln2_b": jnp.zeros((window,), f32),
    }


if __name__ == "__main__":
    # Small, module-consistent shapes.
    B = 2
    window = 16
    n_multiv = 7                 # attention runs over n_multiv + 1 = 8 variable positions
    d_model = 32
    n_head, d_k, d_v = 4, 8, 8
    local = 4                    # hard-coded in the module
    # note: the module's d_inner argument is unused (pos_ffn uses window*2)

    root = jax.random.PRNGKey(0)
    k_in, k_p = jax.random.split(root)
    enc_input = jax.random.normal(k_in, (B, window, n_multiv + 1), jnp.float32)
    params = init_params(k_p, d_model=d_model, window=window,
                         n_head=n_head, d_k=d_k, d_v=d_v, local=local)

    fwd = jax.jit(functools.partial(encoder_layer_forward, n_head=n_head,
                                    d_k=d_k, d_v=d_v, local=local))
    enc_out, enc_attn = fwd(enc_input, params)
    enc_out, enc_attn = jax.block_until_ready((enc_out, enc_attn))

    ref_out, ref_attn = encoder_layer_reference(enc_input, params, n_head=n_head,
                                                d_k=d_k, d_v=d_v, local=local)

    assert enc_out.shape == (B, n_multiv + 1, window)
    assert enc_attn.shape == (B, n_head, n_multiv + 1, n_multiv + 1)
    assert bool(jnp.all(jnp.isfinite(enc_out)))
    assert bool(jnp.max(jnp.abs(enc_out - ref_out)) < 5e-2)
    assert bool(jnp.max(jnp.abs(enc_attn - ref_attn)) < 5e-2)
    print("KERNEL_OK")
</pallas_src>

<mosaic_0001>
module attributes {stable_mosaic.version = 11 : i64} {
  func.func @_encoder_layer_kernel(%arg0: i32, %arg1: memref<1x8x16xf32, #tpu.memory_space<vmem>>, %arg2: memref<16x416xf32, #tpu.memory_space<vmem>>, %arg3: memref<1x32xf32, #tpu.memory_space<vmem>>, %arg4: memref<32x64xf32, #tpu.memory_space<vmem>>, %arg5: memref<1x64xf32, #tpu.memory_space<vmem>>, %arg6: memref<16x32xf32, #tpu.memory_space<vmem>>, %arg7: memref<1x32xf32, #tpu.memory_space<vmem>>, %arg8: memref<32x16xf32, #tpu.memory_space<vmem>>, %arg9: memref<1x16xf32, #tpu.memory_space<vmem>>, %arg10: memref<1x16xf32, #tpu.memory_space<vmem>>, %arg11: memref<1x16xf32, #tpu.memory_space<vmem>>, %arg12: memref<16x32xf32, #tpu.memory_space<vmem>>, %arg13: memref<1x32xf32, #tpu.memory_space<vmem>>, %arg14: memref<32x16xf32, #tpu.memory_space<vmem>>, %arg15: memref<1x16xf32, #tpu.memory_space<vmem>>, %arg16: memref<1x16xf32, #tpu.memory_space<vmem>>, %arg17: memref<1x16xf32, #tpu.memory_space<vmem>>, %arg18: memref<1x8x16xf32, #tpu.memory_space<vmem>>, %arg19: memref<1x4x8x8xf32, #tpu.memory_space<vmem>>) attributes {dimension_semantics = [#tpu.dimension_semantics<parallel>], iteration_bounds = array<i64: 2>, scalar_prefetch = 0 : i64, scratch_operands = 0 : i64, tpu.core_type = #tpu.core_type<tc>, window_params = [{transform_indices = @transform_0, window_bounds = array<i64: 1, 8, 16>}, {pipeline_mode = #tpu.pipeline_mode<synchronous>, transform_indices = @transform_1, window_bounds = array<i64: 16, 416>}, {pipeline_mode = #tpu.pipeline_mode<synchronous>, transform_indices = @transform_2, window_bounds = array<i64: 1, 32>}, {pipeline_mode = #tpu.pipeline_mode<synchronous>, transform_indices = @transform_3, window_bounds = array<i64: 32, 64>}, {pipeline_mode = #tpu.pipeline_mode<synchronous>, transform_indices = @transform_4, window_bounds = array<i64: 1, 64>}, {pipeline_mode = #tpu.pipeline_mode<synchronous>, transform_indices = @transform_5, window_bounds = array<i64: 16, 32>}, {pipeline_mode = #tpu.pipeline_mode<synchronous>, transform_indices = @transform_6, window_bounds = array<i64: 1, 32>}, {pipeline_mode = #tpu.pipeline_mode<synchronous>, transform_indices = @transform_7, window_bounds = array<i64: 32, 16>}, {pipeline_mode = #tpu.pipeline_mode<synchronous>, transform_indices = @transform_8, window_bounds = array<i64: 1, 16>}, {pipeline_mode = #tpu.pipeline_mode<synchronous>, transform_indices = @transform_9, window_bounds = array<i64: 1, 16>}, {pipeline_mode = #tpu.pipeline_mode<synchronous>, transform_indices = @transform_10, window_bounds = array<i64: 1, 16>}, {pipeline_mode = #tpu.pipeline_mode<synchronous>, transform_indices = @transform_11, window_bounds = array<i64: 16, 32>}, {pipeline_mode = #tpu.pipeline_mode<synchronous>, transform_indices = @transform_12, window_bounds = array<i64: 1, 32>}, {pipeline_mode = #tpu.pipeline_mode<synchronous>, transform_indices = @transform_13, window_bounds = array<i64: 32, 16>}, {pipeline_mode = #tpu.pipeline_mode<synchronous>, transform_indices = @transform_14, window_bounds = array<i64: 1, 16>}, {pipeline_mode = #tpu.pipeline_mode<synchronous>, transform_indices = @transform_15, window_bounds = array<i64: 1, 16>}, {pipeline_mode = #tpu.pipeline_mode<synchronous>, transform_indices = @transform_16, window_bounds = array<i64: 1, 16>}, {transform_indices = @transform_17, window_bounds = array<i64: 1, 8, 16>}, {transform_indices = @transform_18, window_bounds = array<i64: 1, 4, 8, 8>}]} {
    %c0 = arith.constant 0 : index
    %c0_0 = arith.constant 0 : index
    %c0_1 = arith.constant 0 : index
    %0 = vector.load %arg1[%c0, %c0_0, %c0_1] : memref<1x8x16xf32, #tpu.memory_space<vmem>>, vector<1x8x16xf32>
    %1 = vector.shape_cast %0 : vector<1x8x16xf32> to vector<8x16xf32>
    %c0_2 = arith.constant 0 : index
    %c0_3 = arith.constant 0 : index
    %2 = vector.load %arg2[%c0_2, %c0_3] : memref<16x416xf32, #tpu.memory_space<vmem>>, vector<16x416xf32>
    %cst = arith.constant dense<0.000000e+00> : vector<8x416xf32>
    %3 = tpu.matmul %1, %2, %cst {dimension_numbers = #tpu.dot_dimension_numbers<[1], [0], [0], [1], [0, 0, 1, 1], [], []>} : vector<8x16xf32>, vector<16x416xf32>, vector<8x416xf32> -> vector<8x416xf32>
    %4 = vector.extract_strided_slice %3 {offsets = [0, 0], sizes = [8, 32], strides = [1, 1]} : vector<8x416xf32> to vector<8x32xf32>
    %5 = vector.extract_strided_slice %3 {offsets = [0, 32], sizes = [8, 32], strides = [1, 1]} : vector<8x416xf32> to vector<8x32xf32>
    %6 = arith.maximumf %4, %5 : vector<8x32xf32>
    %7 = vector.extract_strided_slice %3 {offsets = [0, 64], sizes = [8, 32], strides = [1, 1]} : vector<8x416xf32> to vector<8x32xf32>
    %8 = arith.maximumf %6, %7 : vector<8x32xf32>
    %9 = vector.extract_strided_slice %3 {offsets = [0, 96], sizes = [8, 32], strides = [1, 1]} : vector<8x416xf32> to vector<8x32xf32>
    %10 = arith.maximumf %8, %9 : vector<8x32xf32>
    %11 = vector.extract_strided_slice %3 {offsets = [0, 128], sizes = [8, 32], strides = [1, 1]} : vector<8x416xf32> to vector<8x32xf32>
    %12 = arith.maximumf %10, %11 : vector<8x32xf32>
    %13 = vector.extract_strided_slice %3 {offsets = [0, 160], sizes = [8, 32], strides = [1, 1]} : vector<8x416xf32> to vector<8x32xf32>
    %14 = arith.maximumf %12, %13 : vector<8x32xf32>
    %15 = vector.extract_strided_slice %3 {offsets = [0, 192], sizes = [8, 32], strides = [1, 1]} : vector<8x416xf32> to vector<8x32xf32>
    %16 = arith.maximumf %14, %15 : vector<8x32xf32>
    %17 = vector.extract_strided_slice %3 {offsets = [0, 224], sizes = [8, 32], strides = [1, 1]} : vector<8x416xf32> to vector<8x32xf32>
    %18 = arith.maximumf %16, %17 : vector<8x32xf32>
    %19 = vector.extract_strided_slice %3 {offsets = [0, 256], sizes = [8, 32], strides = [1, 1]} : vector<8x416xf32> to vector<8x32xf32>
    %20 = arith.maximumf %18, %19 : vector<8x32xf32>
    %21 = vector.extract_strided_slice %3 {offsets = [0, 288], sizes = [8, 32], strides = [1, 1]} : vector<8x416xf32> to vector<8x32xf32>
    %22 = arith.maximumf %20, %21 : vector<8x32xf32>
    %23 = vector.extract_strided_slice %3 {offsets = [0, 320], sizes = [8, 32], strides = [1, 1]} : vector<8x416xf32> to vector<8x32xf32>
    %24 = arith.maximumf %22, %23 : vector<8x32xf32>
    %25 = vector.extract_strided_slice %3 {offsets = [0, 352], sizes = [8, 32], strides = [1, 1]} : vector<8x416xf32> to vector<8x32xf32>
    %26 = arith.maximumf %24, %25 : vector<8x32xf32>
    %27 = vector.extract_strided_slice %3 {offsets = [0, 384], sizes = [8, 32], strides = [1, 1]} : vector<8x416xf32> to vector<8x32xf32>
    %28 = arith.maximumf %26, %27 : vector<8x32xf32>
    %c0_4 = arith.constant 0 : index
    %c0_5 = arith.constant 0 : index
    %29 = vector.load %arg3[%c0_4, %c0_5] : memref<1x32xf32, #tpu.memory_space<vmem>>, vector<1x32xf32>
    %30 = vector.broadcast %29 : vector<1x32xf32> to vector<8x32xf32>
    %31 = arith.addf %28, %30 : vector<8x32xf32>
    %cst_6 = arith.constant 0.000000e+00 : f32
    %32 = vector.broadcast %cst_6 : f32 to vector<8x32xf32>
    %33 = arith.maximumf %31, %32 : vector<8x32xf32>
    %c0_7 = arith.constant 0 : index
    %c0_8 = arith.constant 0 : index
    %34 = vector.load %arg4[%c0_7, %c0_8] : memref<32x64xf32, #tpu.memory_space<vmem>>, vector<32x64xf32>
    %cst_9 = arith.constant dense<0.000000e+00> : vector<8x64xf32>
    %35 = tpu.matmul %33, %34, %cst_9 {dimension_numbers = #tpu.dot_dimension_numbers<[1], [0], [0], [1], [0, 0, 1, 1], [], []>} : vector<8x32xf32>, vector<32x64xf32>, vector<8x64xf32> -> vector<8x64xf32>
    %c0_10 = arith.constant 0 : index
    %c0_11 = arith.constant 0 : index
    %36 = vector.load %arg5[%c0_10, %c0_11] : memref<1x64xf32, #tpu.memory_space<vmem>>, vector<1x64xf32>
    %37 = vector.broadcast %36 : vector<1x64xf32> to vector<8x64xf32>
    %38 = arith.addf %35, %37 : vector<8x64xf32>
    %c0_12 = arith.constant 0 : index
    %c0_13 = arith.constant 0 : index
    %39 = vector.load %arg6[%c0_12, %c0_13] : memref<16x32xf32, #tpu.memory_space<vmem>>, vector<16x32xf32>
    %cst_14 = arith.constant dense<0.000000e+00> : vector<8x32xf32>
    %40 = tpu.matmul %1, %39, %cst_14 {dimension_numbers = #tpu.dot_dimension_numbers<[1], [0], [0], [1], [0, 0, 1, 1], [], []>} : vector<8x16xf32>, vector<16x32xf32>, vector<8x32xf32> -> vector<8x32xf32>
    %c0_15 = arith.constant 0 : index
    %c0_16 = arith.constant 0 : index
    %41 = vector.load %arg7[%c0_15, %c0_16] : memref<1x32xf32, #tpu.memory_space<vmem>>, vector<1x32xf32>
    %42 = vector.broadcast %41 : vector<1x32xf32> to vector<8x32xf32>
    %43 = arith.addf %40, %42 : vector<8x32xf32>
    %44 = vector.extract_strided_slice %38 {offsets = [0, 0], sizes = [8, 8], strides = [1, 1]} : vector<8x64xf32> to vector<8x8xf32>
    %45 = vector.extract_strided_slice %38 {offsets = [0, 32], sizes = [8, 8], strides = [1, 1]} : vector<8x64xf32> to vector<8x8xf32>
    %46 = vector.extract_strided_slice %43 {offsets = [0, 0], sizes = [8, 8], strides = [1, 1]} : vector<8x32xf32> to vector<8x8xf32>
    %cst_17 = arith.constant dense<0.000000e+00> : vector<8x8xf32>
    %47 = tpu.matmul %44, %45, %cst_17 {dimension_numbers = #tpu.dot_dimension_numbers<[1], [1], [0], [0], [0, 0, 1, 0], [], []>} : vector<8x8xf32>, vector<8x8xf32>, vector<8x8xf32> -> vector<8x8xf32>
    %cst_18 = arith.constant 0.353553385 : f32
    %48 = vector.broadcast %cst_18 : f32 to vector<8x8xf32>
    %49 = arith.mulf %47, %48 : vector<8x8xf32>
    %cst_19 = arith.constant dense<0xFF800000> : vector<8xf32>
    %50 = vector.multi_reduction <maximumf>, %49, %cst_19 [1] : vector<8x8xf32> to vector<8xf32>
    %51 = vector.shape_cast %50 : vector<8xf32> to vector<8x1xf32>
    %52 = vector.broadcast %51 : vector<8x1xf32> to vector<8x8xf32>
    %53 = arith.subf %49, %52 : vector<8x8xf32>
    %54 = math.exp %53 : vector<8x8xf32>
    %cst_20 = arith.constant dense<0.000000e+00> : vector<8xf32>
    %55 = vector.multi_reduction <add>, %54, %cst_20 [1] : vector<8x8xf32> to vector<8xf32>
    %56 = vector.shape_cast %55 : vector<8xf32> to vector<8x1xf32>
    %57 = tpu.reciprocal %56 {approx = true} : vector<8x1xf32> -> vector<8x1xf32>
    %58 = vector.broadcast %57 : vector<8x1xf32> to vector<8x8xf32>
    %59 = arith.mulf %54, %58 : vector<8x8xf32>
    %c0_21 = arith.constant 0 : index
    %c0_22 = arith.constant 0 : index
    %c0_23 = arith.constant 0 : index
    %c0_24 = arith.constant 0 : index
    %60 = vector.load %arg19[%c0_21, %c0_22, %c0_23, %c0_24] : memref<1x4x8x8xf32, #tpu.memory_space<vmem>>, vector<1x1x8x8xf32>
    %61 = vector.shape_cast %60 : vector<1x1x8x8xf32> to vector<8x8xf32>
    %62 = vector.shape_cast %59 : vector<8x8xf32> to vector<1x1x8x8xf32>
    tpu.vector_store %arg19[%c0_21, %c0_22, %c0_23, %c0_24], %62 {strides = array<i32>} : memref<1x4x8x8xf32, #tpu.memory_space<vmem>>, vector<1x1x8x8xf32>,
    %cst_25 = arith.constant dense<0.000000e+00> : vector<8x8xf32>
    %63 = tpu.matmul %59, %46, %cst_25 {dimension_numbers = #tpu.dot_dimension_numbers<[1], [0], [0], [1], [0, 0, 1, 1], [], []>} : vector<8x8xf32>, vector<8x8xf32>, vector<8x8xf32> -> vector<8x8xf32>
    %64 = vector.extract_strided_slice %38 {offsets = [0, 8], sizes = [8, 8], strides = [1, 1]} : vector<8x64xf32> to vector<8x8xf32>
    %65 = vector.extract_strided_slice %38 {offsets = [0, 40], sizes = [8, 8], strides = [1, 1]} : vector<8x64xf32> to vector<8x8xf32>
    %66 = vector.extract_strided_slice %43 {offsets = [0, 8], sizes = [8, 8], strides = [1, 1]} : vector<8x32xf32> to vector<8x8xf32>
    %cst_26 = arith.constant dense<0.000000e+00> : vector<8x8xf32>
    %67 = tpu.matmul %64, %65, %cst_26 {dimension_numbers = #tpu.dot_dimension_numbers<[1], [1], [0], [0], [0, 0, 1, 0], [], []>} : vector<8x8xf32>, vector<8x8xf32>, vector<8x8xf32> -> vector<8x8xf32>
    %cst_27 = arith.constant 0.353553385 : f32
    %68 = vector.broadcast %cst_27 : f32 to vector<8x8xf32>
    %69 = arith.mulf %67, %68 : vector<8x8xf32>
    %cst_28 = arith.constant dense<0xFF800000> : vector<8xf32>
    %70 = vector.multi_reduction <maximumf>, %69, %cst_28 [1] : vector<8x8xf32> to vector<8xf32>
    %71 = vector.shape_cast %70 : vector<8xf32> to vector<8x1xf32>
    %72 = vector.broadcast %71 : vector<8x1xf32> to vector<8x8xf32>
    %73 = arith.subf %69, %72 : vector<8x8xf32>
    %74 = math.exp %73 : vector<8x8xf32>
    %cst_29 = arith.constant dense<0.000000e+00> : vector<8xf32>
    %75 = vector.multi_reduction <add>, %74, %cst_29 [1] : vector<8x8xf32> to vector<8xf32>
    %76 = vector.shape_cast %75 : vector<8xf32> to vector<8x1xf32>
    %77 = tpu.reciprocal %76 {approx = true} : vector<8x1xf32> -> vector<8x1xf32>
    %78 = vector.broadcast %77 : vector<8x1xf32> to vector<8x8xf32>
    %79 = arith.mulf %74, %78 : vector<8x8xf32>
    %c0_30 = arith.constant 0 : index
    %c1 = arith.constant 1 : index
    %c0_31 = arith.constant 0 : index
    %c0_32 = arith.constant 0 : index
    %80 = vector.load %arg19[%c0_30, %c1, %c0_31, %c0_32] : memref<1x4x8x8xf32, #tpu.memory_space<vmem>>, vector<1x1x8x8xf32>
    %81 = vector.shape_cast %80 : vector<1x1x8x8xf32> to vector<8x8xf32>
    %82 = vector.shape_cast %79 : vector<8x8xf32> to vector<1x1x8x8xf32>
    tpu.vector_store %arg19[%c0_30, %c1, %c0_31, %c0_32], %82 {strides = array<i32>} : memref<1x4x8x8xf32, #tpu.memory_space<vmem>>, vector<1x1x8x8xf32>,
    %cst_33 = arith.constant dense<0.000000e+00> : vector<8x8xf32>
    %83 = tpu.matmul %79, %66, %cst_33 {dimension_numbers = #tpu.dot_dimension_numbers<[1], [0], [0], [1], [0, 0, 1, 1], [], []>} : vector<8x8xf32>, vector<8x8xf32>, vector<8x8xf32> -> vector<8x8xf32>
    %84 = vector.extract_strided_slice %38 {offsets = [0, 16], sizes = [8, 8], strides = [1, 1]} : vector<8x64xf32> to vector<8x8xf32>
    %85 = vector.extract_strided_slice %38 {offsets = [0, 48], sizes = [8, 8], strides = [1, 1]} : vector<8x64xf32> to vector<8x8xf32>
    %86 = vector.extract_strided_slice %43 {offsets = [0, 16], sizes = [8, 8], strides = [1, 1]} : vector<8x32xf32> to vector<8x8xf32>
    %cst_34 = arith.constant dense<0.000000e+00> : vector<8x8xf32>
    %87 = tpu.matmul %84, %85, %cst_34 {dimension_numbers = #tpu.dot_dimension_numbers<[1], [1], [0], [0], [0, 0, 1, 0], [], []>} : vector<8x8xf32>, vector<8x8xf32>, vector<8x8xf32> -> vector<8x8xf32>
    %cst_35 = arith.constant 0.353553385 : f32
    %88 = vector.broadcast %cst_35 : f32 to vector<8x8xf32>
    %89 = arith.mulf %87, %88 : vector<8x8xf32>
    %cst_36 = arith.constant dense<0xFF800000> : vector<8xf32>
    %90 = vector.multi_reduction <maximumf>, %89, %cst_36 [1] : vector<8x8xf32> to vector<8xf32>
    %91 = vector.shape_cast %90 : vector<8xf32> to vector<8x1xf32>
    %92 = vector.broadcast %91 : vector<8x1xf32> to vector<8x8xf32>
    %93 = arith.subf %89, %92 : vector<8x8xf32>
    %94 = math.exp %93 : vector<8x8xf32>
    %cst_37 = arith.constant dense<0.000000e+00> : vector<8xf32>
    %95 = vector.multi_reduction <add>, %94, %cst_37 [1] : vector<8x8xf32> to vector<8xf32>
    %96 = vector.shape_cast %95 : vector<8xf32> to vector<8x1xf32>
    %97 = tpu.reciprocal %96 {approx = true} : vector<8x1xf32> -> vector<8x1xf32>
    %98 = vector.broadcast %97 : vector<8x1xf32> to vector<8x8xf32>
    %99 = arith.mulf %94, %98 : vector<8x8xf32>
    %c0_38 = arith.constant 0 : index
    %c2 = arith.constant 2 : index
    %c0_39 = arith.constant 0 : index
    %c0_40 = arith.constant 0 : index
    %100 = vector.load %arg19[%c0_38, %c2, %c0_39, %c0_40] : memref<1x4x8x8xf32, #tpu.memory_space<vmem>>, vector<1x1x8x8xf32>
    %101 = vector.shape_cast %100 : vector<1x1x8x8xf32> to vector<8x8xf32>
    %102 = vector.shape_cast %99 : vector<8x8xf32> to vector<1x1x8x8xf32>
    tpu.vector_store %arg19[%c0_38, %c2, %c0_39, %c0_40], %102 {strides = array<i32>} : memref<1x4x8x8xf32, #tpu.memory_space<vmem>>, vector<1x1x8x8xf32>,
    %cst_41 = arith.constant dense<0.000000e+00> : vector<8x8xf32>
    %103 = tpu.matmul %99, %86, %cst_41 {dimension_numbers = #tpu.dot_dimension_numbers<[1], [0], [0], [1], [0, 0, 1, 1], [], []>} : vector<8x8xf32>, vector<8x8xf32>, vector<8x8xf32> -> vector<8x8xf32>
    %104 = vector.extract_strided_slice %38 {offsets = [0, 24], sizes = [8, 8], strides = [1, 1]} : vector<8x64xf32> to vector<8x8xf32>
    %105 = vector.extract_strided_slice %38 {offsets = [0, 56], sizes = [8, 8], strides = [1, 1]} : vector<8x64xf32> to vector<8x8xf32>
    %106 = vector.extract_strided_slice %43 {offsets = [0, 24], sizes = [8, 8], strides = [1, 1]} : vector<8x32xf32> to vector<8x8xf32>
    %cst_42 = arith.constant dense<0.000000e+00> : vector<8x8xf32>
    %107 = tpu.matmul %104, %105, %cst_42 {dimension_numbers = #tpu.dot_dimension_numbers<[1], [1], [0], [0], [0, 0, 1, 0], [], []>} : vector<8x8xf32>, vector<8x8xf32>, vector<8x8xf32> -> vector<8x8xf32>
    %cst_43 = arith.constant 0.353553385 : f32
    %108 = vector.broadcast %cst_43 : f32 to vector<8x8xf32>
    %109 = arith.mulf %107, %108 : vector<8x8xf32>
    %cst_44 = arith.constant dense<0xFF800000> : vector<8xf32>
    %110 = vector.multi_reduction <maximumf>, %109, %cst_44 [1] : vector<8x8xf32> to vector<8xf32>
    %111 = vector.shape_cast %110 : vector<8xf32> to vector<8x1xf32>
    %112 = vector.broadcast %111 : vector<8x1xf32> to vector<8x8xf32>
    %113 = arith.subf %109, %112 : vector<8x8xf32>
    %114 = math.exp %113 : vector<8x8xf32>
    %cst_45 = arith.constant dense<0.000000e+00> : vector<8xf32>
    %115 = vector.multi_reduction <add>, %114, %cst_45 [1] : vector<8x8xf32> to vector<8xf32>
    %116 = vector.shape_cast %115 : vector<8xf32> to vector<8x1xf32>
    %117 = tpu.reciprocal %116 {approx = true} : vector<8x1xf32> -> vector<8x1xf32>
    %118 = vector.broadcast %117 : vector<8x1xf32> to vector<8x8xf32>
    %119 = arith.mulf %114, %118 : vector<8x8xf32>
    %c0_46 = arith.constant 0 : index
    %c3 = arith.constant 3 : index
    %c0_47 = arith.constant 0 : index
    %c0_48 = arith.constant 0 : index
    %120 = vector.load %arg19[%c0_46, %c3, %c0_47, %c0_48] : memref<1x4x8x8xf32, #tpu.memory_space<vmem>>, vector<1x1x8x8xf32>
    %121 = vector.shape_cast %120 : vector<1x1x8x8xf32> to vector<8x8xf32>
    %122 = vector.shape_cast %119 : vector<8x8xf32> to vector<1x1x8x8xf32>
    tpu.vector_store %arg19[%c0_46, %c3, %c0_47, %c0_48], %122 {strides = array<i32>} : memref<1x4x8x8xf32, #tpu.memory_space<vmem>>, vector<1x1x8x8xf32>,
    %cst_49 = arith.constant dense<0.000000e+00> : vector<8x8xf32>
    %123 = tpu.matmul %119, %106, %cst_49 {dimension_numbers = #tpu.dot_dimension_numbers<[1], [0], [0], [1], [0, 0, 1, 1], [], []>} : vector<8x8xf32>, vector<8x8xf32>, vector<8x8xf32> -> vector<8x8xf32>
    %124 = tpu.concatenate %63, %83, %103, %123 in 1 : vector<8x8xf32>, vector<8x8xf32>, vector<8x8xf32>, vector<8x8xf32> -> vector<8x32xf32>
    %c0_50 = arith.constant 0 : index
    %c0_51 = arith.constant 0 : index
    %125 = vector.load %arg8[%c0_50, %c0_51] : memref<32x16xf32, #tpu.memory_space<vmem>>, vector<32x16xf32>
    %cst_52 = arith.constant dense<0.000000e+00> : vector<8x16xf32>
    %126 = tpu.matmul %124, %125, %cst_52 {dimension_numbers = #tpu.dot_dimension_numbers<[1], [0], [0], [1], [0, 0, 1, 1], [], []>} : vector<8x32xf32>, vector<32x16xf32>, vector<8x16xf32> -> vector<8x16xf32>
    %c0_53 = arith.constant 0 : index
    %c0_54 = arith.constant 0 : index
    %127 = vector.load %arg9[%c0_53, %c0_54] : memref<1x16xf32, #tpu.memory_space<vmem>>, vector<1x16xf32>
    %128 = vector.broadcast %127 : vector<1x16xf32> to vector<8x16xf32>
    %129 = arith.addf %126, %128 : vector<8x16xf32>
    %130 = arith.addf %129, %1 : vector<8x16xf32>
    %cst_55 = arith.constant dense<0.000000e+00> : vector<8xf32>
    %131 = vector.multi_reduction <add>, %130, %cst_55 [1] : vector<8x16xf32> to vector<8xf32>
    %132 = vector.shape_cast %131 : vector<8xf32> to vector<8x1xf32>
    %cst_56 = arith.constant 1.600000e+01 : f32
    %133 = vector.broadcast %cst_56 : f32 to vector<8x1xf32>
    %134 = arith.divf %132, %133 : vector<8x1xf32>
    %135 = vector.broadcast %134 : vector<8x1xf32> to vector<8x16xf32>
    %136 = arith.subf %130, %135 : vector<8x16xf32>
    %137 = arith.mulf %136, %136 : vector<8x16xf32>
    %cst_57 = arith.constant dense<0.000000e+00> : vector<8xf32>
    %138 = vector.multi_reduction <add>, %137, %cst_57 [1] : vector<8x16xf32> to vector<8xf32>
    %139 = vector.shape_cast %138 : vector<8xf32> to vector<8x1xf32>
    %cst_58 = arith.constant 1.600000e+01 : f32
    %140 = vector.broadcast %cst_58 : f32 to vector<8x1xf32>
    %141 = arith.divf %139, %140 : vector<8x1xf32>
    %142 = vector.broadcast %134 : vector<8x1xf32> to vector<8x16xf32>
    %143 = arith.subf %130, %142 : vector<8x16xf32>
    %cst_59 = arith.constant 9.99999974E-6 : f32
    %144 = vector.broadcast %cst_59 : f32 to vector<8x1xf32>
    %145 = arith.addf %141, %144 : vector<8x1xf32>
    %146 = math.rsqrt %145 : vector<8x1xf32>
    %147 = vector.broadcast %146 : vector<8x1xf32> to vector<8x16xf32>
    %148 = arith.mulf %143, %147 : vector<8x16xf32>
    %c0_60 = arith.constant 0 : index
    %c0_61 = arith.constant 0 : index
    %149 = vector.load %arg10[%c0_60, %c0_61] : memref<1x16xf32, #tpu.memory_space<vmem>>, vector<1x16xf32>
    %150 = vector.broadcast %149 : vector<1x16xf32> to vector<8x16xf32>
    %151 = arith.mulf %148, %150 : vector<8x16xf32>
    %c0_62 = arith.constant 0 : index
    %c0_63 = arith.constant 0 : index
    %152 = vector.load %arg11[%c0_62, %c0_63] : memref<1x16xf32, #tpu.memory_space<vmem>>, vector<1x16xf32>
    %153 = vector.broadcast %152 : vector<1x16xf32> to vector<8x16xf32>
    %154 = arith.addf %151, %153 : vector<8x16xf32>
    %c0_64 = arith.constant 0 : index
    %c0_65 = arith.constant 0 : index
    %155 = vector.load %arg12[%c0_64, %c0_65] : memref<16x32xf32, #tpu.memory_space<vmem>>, vector<16x32xf32>
    %cst_66 = arith.constant dense<0.000000e+00> : vector<8x32xf32>
    %156 = tpu.matmul %154, %155, %cst_66 {dimension_numbers = #tpu.dot_dimension_numbers<[1], [0], [0], [1], [0, 0, 1, 1], [], []>} : vector<8x16xf32>, vector<16x32xf32>, vector<8x32xf32> -> vector<8x32xf32>
    %c0_67 = arith.constant 0 : index
    %c0_68 = arith.constant 0 : index
    %157 = vector.load %arg13[%c0_67, %c0_68] : memref<1x32xf32, #tpu.memory_space<vmem>>, vector<1x32xf32>
    %158 = vector.broadcast %157 : vector<1x32xf32> to vector<8x32xf32>
    %159 = arith.addf %156, %158 : vector<8x32xf32>
    %cst_69 = arith.constant 0.000000e+00 : f32
    %160 = vector.broadcast %cst_69 : f32 to vector<8x32xf32>
    %161 = arith.maximumf %159, %160 : vector<8x32xf32>
    %c0_70 = arith.constant 0 : index
    %c0_71 = arith.constant 0 : index
    %162 = vector.load %arg14[%c0_70, %c0_71] : memref<32x16xf32, #tpu.memory_space<vmem>>, vector<32x16xf32>
    %cst_72 = arith.constant dense<0.000000e+00> : vector<8x16xf32>
    %163 = tpu.matmul %161, %162, %cst_72 {dimension_numbers = #tpu.dot_dimension_numbers<[1], [0], [0], [1], [0, 0, 1, 1], [], []>} : vector<8x32xf32>, vector<32x16xf32>, vector<8x16xf32> -> vector<8x16xf32>
    %c0_73 = arith.constant 0 : index
    %c0_74 = arith.constant 0 : index
    %164 = vector.load %arg15[%c0_73, %c0_74] : memref<1x16xf32, #tpu.memory_space<vmem>>, vector<1x16xf32>
    %165 = vector.broadcast %164 : vector<1x16xf32> to vector<8x16xf32>
    %166 = arith.addf %163, %165 : vector<8x16xf32>
    %167 = arith.addf %166, %154 : vector<8x16xf32>
    %cst_75 = arith.constant dense<0.000000e+00> : vector<8xf32>
    %168 = vector.multi_reduction <add>, %167, %cst_75 [1] : vector<8x16xf32> to vector<8xf32>
    %169 = vector.shape_cast %168 : vector<8xf32> to vector<8x1xf32>
    %cst_76 = arith.constant 1.600000e+01 : f32
    %170 = vector.broadcast %cst_76 : f32 to vector<8x1xf32>
    %171 = arith.divf %169, %170 : vector<8x1xf32>
    %172 = vector.broadcast %171 : vector<8x1xf32> to vector<8x16xf32>
    %173 = arith.subf %167, %172 : vector<8x16xf32>
    %174 = arith.mulf %173, %173 : vector<8x16xf32>
    %cst_77 = arith.constant dense<0.000000e+00> : vector<8xf32>
    %175 = vector.multi_reduction <add>, %174, %cst_77 [1] : vector<8x16xf32> to vector<8xf32>
    %176 = vector.shape_cast %175 : vector<8xf32> to vector<8x1xf32>
    %cst_78 = arith.constant 1.600000e+01 : f32
    %177 = vector.broadcast %cst_78 : f32 to vector<8x1xf32>
    %178 = arith.divf %176, %177 : vector<8x1xf32>
    %179 = vector.broadcast %171 : vector<8x1xf32> to vector<8x16xf32>
    %180 = arith.subf %167, %179 : vector<8x16xf32>
    %cst_79 = arith.constant 9.99999974E-6 : f32
    %181 = vector.broadcast %cst_79 : f32 to vector<8x1xf32>
    %182 = arith.addf %178, %181 : vector<8x1xf32>
    %183 = math.rsqrt %182 : vector<8x1xf32>
    %184 = vector.broadcast %183 : vector<8x1xf32> to vector<8x16xf32>
    %185 = arith.mulf %180, %184 : vector<8x16xf32>
    %c0_80 = arith.constant 0 : index
    %c0_81 = arith.constant 0 : index
    %186 = vector.load %arg16[%c0_80, %c0_81] : memref<1x16xf32, #tpu.memory_space<vmem>>, vector<1x16xf32>
    %187 = vector.broadcast %186 : vector<1x16xf32> to vector<8x16xf32>
    %188 = arith.mulf %185, %187 : vector<8x16xf32>
    %c0_82 = arith.constant 0 : index
    %c0_83 = arith.constant 0 : index
    %189 = vector.load %arg17[%c0_82, %c0_83] : memref<1x16xf32, #tpu.memory_space<vmem>>, vector<1x16xf32>
    %190 = vector.broadcast %189 : vector<1x16xf32> to vector<8x16xf32>
    %191 = arith.addf %188, %190 : vector<8x16xf32>
    %c0_84 = arith.constant 0 : index
    %c0_85 = arith.constant 0 : index
    %c0_86 = arith.constant 0 : index
    %192 = vector.load %arg18[%c0_84, %c0_85, %c0_86] : memref<1x8x16xf32, #tpu.memory_space<vmem>>, vector<1x8x16xf32>
    %193 = vector.shape_cast %192 : vector<1x8x16xf32> to vector<8x16xf32>
    %194 = vector.shape_cast %191 : vector<8x16xf32> to vector<1x8x16xf32>
    tpu.vector_store %arg18[%c0_84, %c0_85, %c0_86], %194 {strides = array<i32>} : memref<1x8x16xf32, #tpu.memory_space<vmem>>, vector<1x8x16xf32>,
    return
  }
  func.func @transform_0(%arg0: i32) -> (i32, i32, i32) {
    %c0_i32 = arith.constant 0 : i32
    %c0_i32_0 = arith.constant 0 : i32
    %c0_i32_1 = arith.constant 0 : i32
    return %arg0, %c0_i32, %c0_i32_0 : i32, i32, i32
  }
  func.func @transform_1(%arg0: i32) -> (i32, i32) {
    %c0_i32 = arith.constant 0 : i32
    %c0_i32_0 = arith.constant 0 : i32
    %c0_i32_1 = arith.constant 0 : i32
    return %c0_i32, %c0_i32_0 : i32, i32
  }
  func.func @transform_2(%arg0: i32) -> (i32, i32) {
    %c0_i32 = arith.constant 0 : i32
    %c0_i32_0 = arith.constant 0 : i32
    %c0_i32_1 = arith.constant 0 : i32
    return %c0_i32, %c0_i32_0 : i32, i32
  }
  func.func @transform_3(%arg0: i32) -> (i32, i32) {
    %c0_i32 = arith.constant 0 : i32
    %c0_i32_0 = arith.constant 0 : i32
    %c0_i32_1 = arith.constant 0 : i32
    return %c0_i32, %c0_i32_0 : i32, i32
  }
  func.func @transform_4(%arg0: i32) -> (i32, i32) {
    %c0_i32 = arith.constant 0 : i32
    %c0_i32_0 = arith.constant 0 : i32
    %c0_i32_1 = arith.constant 0 : i32
    return %c0_i32, %c0_i32_0 : i32, i32
  }
  func.func @transform_5(%arg0: i32) -> (i32, i32) {
    %c0_i32 = arith.constant 0 : i32
    %c0_i32_0 = arith.constant 0 : i32
    %c0_i32_1 = arith.constant 0 : i32
    return %c0_i32, %c0_i32_0 : i32, i32
  }
  func.func @transform_6(%arg0: i32) -> (i32, i32) {
    %c0_i32 = arith.constant 0 : i32
    %c0_i32_0 = arith.constant 0 : i32
    %c0_i32_1 = arith.constant 0 : i32
    return %c0_i32, %c0_i32_0 : i32, i32
  }
  func.func @transform_7(%arg0: i32) -> (i32, i32) {
    %c0_i32 = arith.constant 0 : i32
    %c0_i32_0 = arith.constant 0 : i32
    %c0_i32_1 = arith.constant 0 : i32
    return %c0_i32, %c0_i32_0 : i32, i32
  }
  func.func @transform_8(%arg0: i32) -> (i32, i32) {
    %c0_i32 = arith.constant 0 : i32
    %c0_i32_0 = arith.constant 0 : i32
    %c0_i32_1 = arith.constant 0 : i32
    return %c0_i32, %c0_i32_0 : i32, i32
  }
  func.func @transform_9(%arg0: i32) -> (i32, i32) {
    %c0_i32 = arith.constant 0 : i32
    %c0_i32_0 = arith.constant 0 : i32
    %c0_i32_1 = arith.constant 0 : i32
    return %c0_i32, %c0_i32_0 : i32, i32
  }
  func.func @transform_10(%arg0: i32) -> (i32, i32) {
    %c0_i32 = arith.constant 0 : i32
    %c0_i32_0 = arith.constant 0 : i32
    %c0_i32_1 = arith.constant 0 : i32
    return %c0_i32, %c0_i32_0 : i32, i32
  }
  func.func @transform_11(%arg0: i32) -> (i32, i32) {
    %c0_i32 = arith.constant 0 : i32
    %c0_i32_0 = arith.constant 0 : i32
    %c0_i32_1 = arith.constant 0 : i32
    return %c0_i32, %c0_i32_0 : i32, i32
  }
  func.func @transform_12(%arg0: i32) -> (i32, i32) {
    %c0_i32 = arith.constant 0 : i32
    %c0_i32_0 = arith.constant 0 : i32
    %c0_i32_1 = arith.constant 0 : i32
    return %c0_i32, %c0_i32_0 : i32, i32
  }
  func.func @transform_13(%arg0: i32) -> (i32, i32) {
    %c0_i32 = arith.constant 0 : i32
    %c0_i32_0 = arith.constant 0 : i32
    %c0_i32_1 = arith.constant 0 : i32
    return %c0_i32, %c0_i32_0 : i32, i32
  }
  func.func @transform_14(%arg0: i32) -> (i32, i32) {
    %c0_i32 = arith.constant 0 : i32
    %c0_i32_0 = arith.constant 0 : i32
    %c0_i32_1 = arith.constant 0 : i32
    return %c0_i32, %c0_i32_0 : i32, i32
  }
  func.func @transform_15(%arg0: i32) -> (i32, i32) {
    %c0_i32 = arith.constant 0 : i32
    %c0_i32_0 = arith.constant 0 : i32
    %c0_i32_1 = arith.constant 0 : i32
    return %c0_i32, %c0_i32_0 : i32, i32
  }
  func.func @transform_16(%arg0: i32) -> (i32, i32) {
    %c0_i32 = arith.constant 0 : i32
    %c0_i32_0 = arith.constant 0 : i32
    %c0_i32_1 = arith.constant 0 : i32
    return %c0_i32, %c0_i32_0 : i32, i32
  }
  func.func @transform_17(%arg0: i32) -> (i32, i32, i32) {
    %c0_i32 = arith.constant 0 : i32
    %c0_i32_0 = arith.constant 0 : i32
    %c0_i32_1 = arith.constant 0 : i32
    return %arg0, %c0_i32, %c0_i32_0 : i32, i32, i32
  }
  func.func @transform_18(%arg0: i32) -> (i32, i32, i32, i32) {
    %c0_i32 = arith.constant 0 : i32
    %c0_i32_0 = arith.constant 0 : i32
    %c0_i32_1 = arith.constant 0 : i32
    %c0_i32_2 = arith.constant 0 : i32
    return %arg0, %c0_i32, %c0_i32_0, %c0_i32_1 : i32, i32, i32, i32
  }
}

</mosaic_0001>

<bundles_post_ra>
// kernel: encoder_layer_forward.1
= control target key start
LH: loop header
LB: loop body
LE: loop exit
PB: predicated region body
PF: predicated region fallthrough
CT: control target
= control target key end

     0   :  { %s2876_s0 = inlined_call_operand.vmem [shape: f32[2,8,16], index: 0, kind: input, shape index: {}]   ;;  %s2877_s1 = inlined_call_operand.vmem [shape: f32[16,416], index: 1, kind: input, shape index: {}]   ;;  %s2878_s2 = inlined_call_operand.vmem [shape: f32[1,32], index: 2, kind: input, shape index: {}]   ;;  %s2879_s3 = inlined_call_operand.vmem [shape: f32[32,64], index: 3, kind: input, shape index: {}]   ;;  %s2880_s4 = inlined_call_operand.vmem [shape: f32[1,64], index: 4, kind: input, shape index: {}]   ;;  %s2881_s5 = inlined_call_operand.vmem [shape: f32[16,32], index: 5, kind: input, shape index: {}]   ;;  %s2882_s6 = inlined_call_operand.vmem [shape: f32[1,32], index: 6, kind: input, shape index: {}]   ;;  %s2883_s7 = inlined_call_operand.vmem [shape: f32[32,16], index: 7, kind: input, shape index: {}]   ;;  %s2884_s8 = inlined_call_operand.vmem [shape: f32[1,16], index: 8, kind: input, shape index: {}]   ;;  %s2885_s9 = inlined_call_operand.vmem [shape: f32[1,16], index: 9, kind: input, shape index: {}]   ;;  %s2886_s10 = inlined_call_operand.vmem [shape: f32[1,16], index: 10, kind: input, shape index: {}]   ;;  %s2887_s11 = inlined_call_operand.vmem [shape: f32[16,32], index: 11, kind: input, shape index: {}]   ;;  %s2888_s12 = inlined_call_operand.vmem [shape: f32[1,32], index: 12, kind: input, shape index: {}]   ;;  %s2889_s13 = inlined_call_operand.vmem [shape: f32[32,16], index: 13, kind: input, shape index: {}]   ;;  %s2890_s14 = inlined_call_operand.vmem [shape: f32[1,16], index: 14, kind: input, shape index: {}]   ;;  %s2891_s15 = inlined_call_operand.vmem [shape: f32[1,16], index: 15, kind: input, shape index: {}]   ;;  %s2892_s16 = inlined_call_operand.vmem [shape: f32[1,16], index: 16, kind: input, shape index: {}]   ;;  %s2893_s17 = inlined_call_operand.hbm [shape: f32[2,8,16], index: 17, kind: output, shape index: {0}]   ;;  %s2894_s18 = inlined_call_operand.hbm [shape: f32[2,4,8,8], index: 18, kind: output, shape index: {1}]  }
   0x1   :  { %2903 = sst [smem:[#allocation14_spill]] %s2876_s0 }
   0x2   :  { %2904 = sst [smem:[#allocation15_spill]] %s2877_s1 }
   0x3   :  { %2905 = sst [smem:[#allocation16_spill]] %s2878_s2 }
   0x4   :  { %2906 = sst [smem:[#allocation17_spill]] %s2879_s3 }
   0x5   :  { %2907 = sst [smem:[#allocation18_spill]] %s2880_s4 }
   0x6   :  { %24 = vsyncpa [#allocation3], 0 }
   0x7   :  { %26 = vsyncpa [#allocation3 + $0x1], 0 }
   0x8   :  { %27 = vsyncpa [#allocation5], 0 }
   0x9   :  { %29 = vsyncpa [#allocation5 + $0x1], 0  ;;  %s2530_s27 = smov 0   ;;  %s2532_s28 = smov 0  }
   0xa   :  { %s2534_s29 = smov 0   ;;  %s2536_s30 = smov 0  }
   0xb LB: > { %2908 = sst [smem:[#allocation8_spill]] %s2404_s27  ;;  %s2551_s0 = sadd.s32 4294967295, %s2416_s30   ;;  %s2416_s30 = sphi %s2536_s30, %s2926_s30   ;;  %s2412_s29 = sphi %s2534_s29, %s2928_s29   ;;  %s2408_s28 = sphi %s2532_s28, %s2930_s28   ;;  %s2404_s27 = sphi %s2530_s27, %s2929_s27  }
   0xc   : > { %2909 = sst [smem:[#allocation9_spill]] %s2412_s29  ;;  %s2076_s19 = sadd.s32 4294967294, %s2416_s30  }
   0xd   : > { %2910 = sst [smem:[#allocation10_spill]] %s2416_s30  ;;  %s2555_s1 = sadd.s32 1, %s2416_s30  }
   0xe   : > { %2911 = sst [smem:[#allocation11_spill]] %s2555_s1  ;;  %s404_s20 = sadd.s32 1, %s2412_s29 }
   0xf   : > { %s401_s21 = ssub.s32 %s2416_s30, %s2555_s1  ;;  %p414_p0 = scmp.ne.s32.totalorder %s2412_s29, %s2408_s28 }
  0x10   : > { %p402_p1 = scmp.eq.s32.totalorder %s401_s21, 0  ;;  %p415_p2 = scmp.eq.s32.totalorder %s2551_s0, 1 }
  0x11   : > { %p420_p3 = scmp.ne.s32.totalorder %s2408_s28, %s2404_s27  ;;  %p421_p4 = scmp.eq.s32.totalorder %s2076_s19, 1 }
  0x12   : > { %s2566_s22 = scalar_select %p402_p1, %s2412_s29, %s404_s20  }
  0x13   : > { %p2568_p5 = por %p415_p2, %p414_p0  ;;  %p2572_p6 = por %p421_p4, %p420_p3 }
  0x14   : > { %2912 = sst [smem:[#allocation12_spill]] %s2566_s22  ;;  %p2079_p7 = scmp.ge.s32.totalorder %s2416_s30, 1 }
  0x15   : > { %s2914_s23 = scalar_select %p2572_p6, 1, 0 }
  0x16   : > { %p520_p8 = scmp.lt.s32.totalorder %s2416_s30, 3 }
  0x17   : > { %2915 = sst [smem:[#allocation13_spill]] %s2914_s23 }
  0x18   : > { %p521_p9 = pnand %p2079_p7, %p520_p8 }
  0x19   : > { %s2916_s26 = sld [smem:[#allocation15_spill]] (!%p521_p9)  ;;  %p578_p10 = scmp.lt.s32.totalorder (!%p521_p9), %s2551_s0, 1 }
  0x1a   : > { %524 = sbr.rel (%p521_p9) target bundleno = 2735 (0xaaf), region = 88  ;;  %s2917_s21 = sld [smem:[#allocation14_spill]] (!%p521_p9) }
  0x1b   : > { %s2419_s27 = smov (!%p521_p9), 32   ;;  %s2420_s30 = smov (!%p521_p9), 96  }
  0x1c   : > { %s2918_s3 = sld [smem:[#allocation17_spill]] (!%p521_p9)  ;;  %s2423_s25 = smov (!%p521_p9), 88  }
  0x1d   : > { %s2919_s19 = sld [smem:[#allocation16_spill]] (!%p521_p9)  ;;  %s2427_s20 = smov (!%p521_p9), 112  }
  0x1e   : > { %s2920_s4 = sld [smem:[#allocation18_spill]] (!%p521_p9)  ;;  %s2432_s1 = smov (!%p521_p9), [#allocation4]  }
  0x1f   : > { %v588_v0 = vld [vmem:[%s2916_s26 + $0x28] sm:$0xff]  ;;  %v587_v1 = vld [vmem:[%s2916_s26 + $0x20] sm:$0xff]  ;;  %v2418_v4 = vmov 0.0   ;;  %s579_s24 = scalar_select %p578_p10, %s2551_s0, 1  ;;  %v590_v5 = vld [vmem:[%s2916_s26 + $0x38] sm:$0xff]  ;;  %vm591_vm0 = vcmask 130048  }
  0x20   : > { %v584_v2 = vld [vmem:[%s2916_s26 + $0x8] sm:$0xff]  ;;  %623 = vmatprep.subr.mxu1 %v588_v0  ;;  %v583_v3 = vld [vmem:[%s2916_s26] sm:$0xff]  ;;  %659 = vmatprep.mubr.f32.mxu1 %v2418_v4  ;;  %v589_v6 = vld [vmem:[%s2916_s26 + $0x30] sm:$0xff]  ;;  %vm2422_vm1 = vmmov 0   ;;  %vm799_vm2 = vcmask 261120   ;;  %vm955_vm3 = vcmask 64512  }
  0x21   : > { %624 = vmatpush1.msra.mxu1 %v587_v1  ;;  %2160 = vmatprep.subr.mxu0 %v2418_v4  ;;  %s2082_s22 = sshll.u32 %s579_s24, 3  ;;  %v586_v8 = vld [vmem:[%s2916_s26 + $0x18] sm:$0xff]  ;;  %v585_v9 = vld [vmem:[%s2916_s26 + $0x10] sm:$0xff]  ;;  %v874_v42 = vld [vmem:[%s2881_s5 + $0x8] sm:$0xff]  ;;  %vm1635_vm4 = vcmask 195584  }
  0x22   : > { %625 = vmatprep.subr.mxu1 %v584_v2  ;;  %s581_s29 = scalar_lea.vmem %s2917_s21, %s2082_s22  ;;  %s2421_s22 = smov 64   ;;  %v791_v13 = vld [vmem:[%s2918_s3 + $0x18] sm:$0xff]  ;;  %v790_v14 = vld [vmem:[%s2918_s3 + $0x10] sm:$0xff]  ;;  %v789_v15 = vld [vmem:[%s2918_s3 + $0x8] sm:$0xff]  ;;  %2168 = vmatprep.mubr.msk.f32.mxu0 %vm2422_vm1, %v2418_v4 }
  0x23   : > { %626 = vmatpush1.msra.mxu1 %v583_v3  ;;  %v2603_v7 = vld [vmem:[%s581_s29] sm:$0xff]  ;;  %2161 = vmatpush3.msra.mxu0 %v791_v13  ;;  %s2428_s21 = smov 104  }
  0x24   : > { %694 = vmatprep.subr.mxu1 %v590_v5  ;;  %2083 = vmatmul.mubr.msk.f32.vlgmr.msra.gmra.mxu1 %vm591_vm0, %v2603_v7  ;;  %v788_v16 = vld [vmem:[%s2918_s3] sm:$0xff] }
  0x25   : > { %695 = vmatpush1.msra.mxu1 %v589_v6  ;;  %730 = vmatprep.mubr.f32.mxu1 %v2418_v4  ;;  %v2085_v38 = vld [vmem:[%s2919_s19] ss:$0 sm:$0xff]  ;;  %s2426_s19 = smov 72  }
  0x26   : > { %696 = vmatprep.subr.mxu1 %v586_v8  ;;  %2162 = vmatprep.subr.mxu0 %v2418_v4  ;;  %v873_v43 = vld [vmem:[%s2881_s5] sm:$0xff] }
  0x27   : > { %697 = vmatpush1.msra.mxu1 %v585_v9  ;;  %2163 = vmatpush3.msra.mxu0 %v790_v14  ;;  %v2086_v44 = vld [vmem:[%s2920_s4] ss:$0 sm:$0xff] }
  0x28   : > { %2084 = vmatmul.mubr.msk.f32.vlgmr.msra.gmra.mxu1 %vm591_vm0, %v2603_v7  ;;  %2171 = vmatprep.subr.mxu1 %v2418_v4  ;;  %v2088_v48 = vld [vmem:[%s2882_s6] ss:$0 sm:$0xff] }
  0x29   : > { %2164 = vmatprep.subr.mxu0 %v2418_v4  ;;  %2175 = vmatprep.mubr.msk.f32.mxu1 %vm2422_vm1, %v2418_v4 }
  0x2a   : > { %2165 = vmatpush3.msra.mxu0 %v789_v15  ;;  %2172 = vmatpush3.msra.mxu1 %v874_v42 }
  0x2b   : > { %2166 = vmatprep.subr.mxu0 %v2418_v4  ;;  %2173 = vmatprep.subr.mxu1 %v2418_v4 }
  0x2c   : > { %2167 = vmatpush3.msra.mxu0 %v788_v16  ;;  %2174 = vmatpush3.msra.mxu1 %v873_v43 }
  0x2d   : > { %2183 = vmatprep.subr.mxu0 %v2418_v4  ;;  %2176 = vmatmul.mubr.msk.f32.vlgmr.msra.gmra.mxu1 %vm591_vm0, %v2603_v7 }
  0x2e   : > { %2178 = vmatprep.subr.mxu1 %v2418_v4  ;;  %2180 = vmatprep.mubr.msk.f32.mxu1 %vm2422_vm1, %v2418_v4 }
  0xe4   : > { %v661_v10 = vpop.f32.mrf.mxu1 }
  0xe5   : > { %746 = vrot.lane.b32.xlu1 %v661_v10, %s2419_s27  ;;  %738 = vrot.lane.b32.xlu0 %v661_v10, %s2420_s30 }
  0xe6   : > { %v663_v11 = vpop.f32.mrf.mxu1 }
  0xe8   : > { %v732_v12 = vpop.f32.mrf.mxu1 }
  0xe9   : > { %742 = vrot.lane.b32.xlu0 %v661_v10, %s2421_s22  ;;  %752 = vrot.lane.b32.xlu1 %v663_v11, %s2420_s30 }
  0xea   : > { %v734_v37 = vpop.f32.mrf.mxu1 }
  0xed   : > { %756 = vrot.lane.b32.xlu0 %v663_v11, %s2421_s22  ;;  %760 = vrot.lane.b32.xlu1 %v663_v11, %s2419_s27  ;;  %v948_v49 = vpop.f32.mrf.mxu1 }
  0xee   : > { %v2668_v50 = vadd.f32 %v2088_v48, %v948_v49  ;;  %v1640_v48 = vld [vmem:[%s2883_s7 + $0x18] sm:$0xff]  ;;  %v1639_v49 = vld [vmem:[%s2883_s7 + $0x10] sm:$0xff] }
  0xef   : > { %v2177_v51 = vpop.f32.mrf.mxu1 }
  0xf1   : > { %766 = vrot.lane.b32.xlu0 %v732_v12, %s2420_s30  ;;  %770 = vrot.lane.b32.xlu1 %v732_v12, %s2421_s22  ;;  %s2425_s22 = smov 120  }
  0xf5   : > { %774 = vrot.lane.b32.xlu0 %v732_v12, %s2419_s27  ;;  %s2424_s27 = smov 80  }
 0x157   : > { %v739_v17 = vpop.permute.xlu0 %738  ;;  %v747_v18 = vpop.permute.xlu1 %746 }
 0x158   : > { %v741_v19 = vmax.f32 %v661_v10, %v739_v17 }
 0x15b   : > { %v743_v20 = vpop.permute.xlu0 %742  ;;  %v753_v23 = vpop.permute.xlu1 %752 }
 0x15c   : > { %v745_v21 = vmax.f32 %v741_v19, %v743_v20 }
 0x15e   : > { %v749_v22 = vmax.f32 %v745_v21, %v747_v18 }
 0x15f   : > { %v757_v26 = vpop.permute.xlu0 %756  ;;  %v761_v28 = vpop.permute.xlu1 %760 }
 0x160   : > { %v750_v24 = vmax.f32 %v749_v22, %v663_v11 }
 0x162   : > { %v755_v25 = vmax.f32 %v750_v24, %v753_v23 }
 0x163   : > { %v767_v30 = vpop.permute.xlu0 %766  ;;  %v771_v33 = vpop.permute.xlu1 %770 }
 0x164   : > { %v759_v27 = vmax.f32 %v755_v25, %v757_v26 }
 0x166   : > { %v763_v29 = vmax.f32 %v759_v27, %v761_v28 }
 0x167   : > { %v775_v35 = vpop.permute.xlu0 %774 }
 0x168   : > { %v764_v31 = vmax.f32 %v763_v29, %v732_v12 }
 0x16a   : > { %v769_v32 = vmax.f32 %v764_v31, %v767_v30 }
 0x16c   : > { %v773_v34 = vmax.f32 %v769_v32, %v771_v33 }
 0x16e   : > { %v777_v36 = vmax.f32 %v773_v34, %v775_v35 }
 0x170   : > { %v778_v39 = vmax.f32 %v777_v36, %v734_v37 }
 0x172   : > { %v786_v40 = vadd.f32 %v2085_v38, %v778_v39 }
 0x174   : > { %v787_v41 = vmax.f32 %v786_v40, 0.0 }
 0x176   : > { %2169 = vmatmul.mubr.msk.f32.vlgmr.msra.gmra.mxu0 %vm799_vm2, %v787_v41 }
 0x177   : > { %2185 = vmatprep.mubr.msk.f32.mxu0 %vm2422_vm1, %v2418_v4  ;;  %2184 = vmatpush3.msra.mxu0 %v2668_v50 }
 0x178   : > { %2193 = vmatprep.subr.mxu0 %v2418_v4 }
 0x236   : > { %v869_v45 = vpop.f32.mrf.mxu0 }
 0x237   : > { %v870_v46 = vadd.f32 %v2086_v44, %v869_v45 }
 0x238   : > { %v2170_v47 = vpop.f32.mrf.mxu0 }
 0x239   : > { %1118 = vrot.lane.b32.xlu0 %v870_v46, %s2423_s25  ;;  %953 = vrot.lane.b32.xlu1 %v870_v46, %s2420_s30  ;;  %s2707_s30 = sand.u32 1, %s2408_s28   ;;  %s2430_s25 = smov 16  }
 0x23a   : > { %s2081_s23 = sshll.u32 %s2707_s30, 5 }
 0x23b   : > { %s2711_s24 = scalar_lea.vmem [#allocation4], %s2081_s23  ;;  %s2902_s23 = smov 8  }
 0x23d   : > { %1287 = vrot.lane.b32.xlu0 %v870_v46, %s2424_s27  ;;  %1116 = vrot.lane.b32.xlu1 %v870_v46, %s2425_s22  ;;  %s2431_s27 = smov 24  }
 0x241   : > { %1455 = vrot.lane.b32.xlu0 %v870_v46, %s2426_s19  ;;  %1285 = vrot.lane.b32.xlu1 %v870_v46, %s2427_s20 }
 0x245   : > { %1453 = vrot.lane.b32.xlu1 %v870_v46, %s2428_s21 }
 0x2ab   : > { %v1119_v52 = vpop.permute.xlu0 %1118  ;;  %v954_v53 = vpop.permute.xlu1 %953 }
 0x2ac   : > { %2179 = vmatpush3.xpose.msk.msra.mxu1 %vm955_vm3, %v954_v53 }
 0x2ad   : > { %2188 = vmatprep.subr.mxu1 %v2418_v4 }
 0x2af   : > { %2181 = vmatmul.mubr.msk.f32.vlgmr.msra.gmra.mxu1 %vm955_vm3, %v870_v46  ;;  %v1117_v54 = vpop.permute.xlu1 %1116  ;;  %v1288_v55 = vpop.permute.xlu0 %1287 }
 0x2b0   : > { %2189 = vmatpush3.xpose.msk.msra.mxu1 %vm955_vm3, %v1119_v52  ;;  %2190 = vmatprep.mubr.msk.f32.mxu1 %vm2422_vm1, %v2418_v4  ;;  %v1637_v52 = vld [vmem:[%s2883_s7] sm:$0xff] }
 0x2b1   : > { %2198 = vmatprep.subr.mxu1 %v2418_v4 }
 0x2b3   : > { %2191 = vmatmul.mubr.msk.f32.vlgmr.msra.gmra.mxu1 %vm955_vm3, %v1117_v54  ;;  %v1286_v56 = vpop.permute.xlu1 %1285  ;;  %v1456_v57 = vpop.permute.xlu0 %1455 }
 0x2b4   : > { %2199 = vmatpush3.xpose.msk.msra.mxu1 %vm955_vm3, %v1288_v55  ;;  %2200 = vmatprep.mubr.msk.f32.mxu1 %vm2422_vm1, %v2418_v4 }
 0x2b5   : > { %2208 = vmatprep.subr.mxu1 %v2418_v4 }
 0x2b7   : > { %2201 = vmatmul.mubr.msk.f32.vlgmr.msra.gmra.mxu1 %vm955_vm3, %v1286_v56  ;;  %v1454_v58 = vpop.permute.xlu1 %1453 }
 0x2b8   : > { %2209 = vmatpush3.xpose.msk.msra.mxu1 %vm955_vm3, %v1456_v57  ;;  %2210 = vmatprep.mubr.msk.f32.mxu1 %vm2422_vm1, %v2418_v4 }
 0x2b9   : > { %2218 = vmatprep.subr.mxu1 %v2418_v4 }
 0x2bb   : > { %2211 = vmatmul.mubr.msk.f32.vlgmr.msra.gmra.mxu1 %vm955_vm3, %v1454_v58 }
 0x2bc   : > { %2226 = vmatprep.mubr.msk.f32.mxu1 %vm2422_vm1, %v2418_v4  ;;  %2219 = vmatpush3.msra.mxu1 %v1640_v48 }
 0x2bd   : > { %2220 = vmatprep.subr.mxu1 %v2418_v4 }
 0x2be   : > { %2221 = vmatpush3.msra.mxu1 %v1639_v49 }
 0x2bf   : > { %2222 = vmatprep.subr.mxu1 %v2418_v4 }
 0x36f   : > { %v1026_v59 = vpop.f32.mrf.mxu1 }
 0x370   : > { %v1030_v60 = vmul.f32 0.35355338, %v1026_v59 }
 0x371   : > { %v2182_v61 = vpop.f32.mrf.mxu1 }
 0x372   : > { %v1031_v62 = vsel %vm955_vm3, %v1030_v60, -inf }
 0x373   : > { %1032 = vmax.xlane.f32.xlu0 %v1031_v62  ;;  %v1190_v63 = vpop.f32.mrf.mxu1 }
 0x374   : > { %v1194_v0 = vmul.f32 0.35355338, %v1190_v63 }
 0x375   : > { %v2192_v1 = vpop.f32.mrf.mxu1 }
 0x376   : > { %v1195_v2 = vsel %vm955_vm3, %v1194_v0, -inf }
 0x377   : > { %1196 = vmax.xlane.f32.xlu1 %v1195_v2  ;;  %v1359_v3 = vpop.f32.mrf.mxu1  ;;  %v2105_v2 = vld [vmem:[%s2884_s8] ss:$0 sm:$0xff] }
 0x378   : > { %v1363_v5 = vmul.f32 0.35355338, %v1359_v3 }
 0x379   : > { %v2202_v6 = vpop.f32.mrf.mxu1 }
 0x37a   : > { %v1364_v8 = vsel %vm955_vm3, %v1363_v5, -inf }
 0x37b   : > { %1365 = vmax.xlane.f32.xlu0 %v1364_v8  ;;  %v1527_v9 = vpop.f32.mrf.mxu1 }
 0x37c   : > { %v1531_v10 = vmul.f32 0.35355338, %v1527_v9 }
 0x37d   : > { %v2212_v11 = vpop.f32.mrf.mxu1 }
 0x37e   : > { %v1532_v12 = vsel %vm955_vm3, %v1531_v10, -inf }
 0x37f   : > { %1533 = vmax.xlane.f32.xlu0 %v1532_v12 }
 0x388   : > { %1209 = vrot.lane.b32.xlu1 %v2668_v50, %s2425_s22 }
 0x3fc   : > { %v1033_v13 = vpop.xlane.xlu0 %1032 }
 0x3fd   : > { %v1034_v14 = vsub.f32 %v1030_v60, %v1033_v13 }
 0x3ff   : > { %v1035_v15 = vmul.f32 1.442695, %v1034_v14 }
 0x400   : > { %v1197_v16 = vpop.xlane.xlu1 %1196 }
 0x401   : > { %2306 = vpow2.f32 %v1035_v15  ;;  %v1198_v17 = vsub.f32 %v1194_v0, %v1197_v16  ;;  %v1753_v15 = vld [vmem:[%s2887_s11 + $0x8] sm:$0xff]  ;;  %v1752_v16 = vld [vmem:[%s2887_s11] sm:$0xff] }
 0x403   : > { %v1199_v18 = vmul.f32 1.442695, %v1198_v17 }
 0x404   : > { %v1366_v19 = vpop.xlane.xlu0 %1365  ;;  %v1210_v33 = vpop.permute.xlu1 %1209 }
 0x405   : > { %2308 = vpow2.f32 %v1199_v18  ;;  %v1367_v20 = vsub.f32 %v1363_v5, %v1366_v19 }
 0x407   : > { %v1368_v21 = vmul.f32 1.442695, %v1367_v20  ;;  %v2107_v20 = vld [vmem:[%s2885_s9] ss:$0 sm:$0xff] }
 0x408   : > { %v1534_v22 = vpop.xlane.xlu0 %1533 }
 0x409   : > { %2310 = vpow2.f32 %v1368_v21  ;;  %v1535_v23 = vsub.f32 %v1531_v10, %v1534_v22  ;;  %v2108_v22 = vld [vmem:[%s2886_s10] ss:$0 sm:$0xff] }
 0x40b   : > { %v1536_v24 = vmul.f32 1.442695, %v1535_v23 }
 0x40d   : > { %2312 = vpow2.f32 %v1536_v24 }
 0x40e   : > { %v2307_v25 = vpop.eup %2306 }
 0x40f   : > { %v1037_v26 = vsel %vm955_vm3, %v2307_v25, 0.0 }
 0x410   : > { %1038 = vadd.xlane.f32.xlu1 %v1037_v26  ;;  %v1837_v26 = vld [vmem:[%s2889_s13 + $0x10] sm:$0xff] }
 0x412   : > { %v2309_v27 = vpop.eup %2308 }
 0x413   : > { %v1201_v28 = vsel %vm955_vm3, %v2309_v27, 0.0 }
 0x414   : > { %1202 = vadd.xlane.f32.xlu0 %v1201_v28  ;;  %v1835_v28 = vld [vmem:[%s2889_s13] sm:$0xff] }
 0x416   : > { %v2311_v29 = vpop.eup %2310 }
 0x417   : > { %v1370_v30 = vsel %vm955_vm3, %v2311_v29, 0.0 }
 0x418   : > { %1371 = vadd.xlane.f32.xlu1 %v1370_v30 }
 0x41a   : > { %v2313_v31 = vpop.eup %2312 }
 0x41b   : > { %v1538_v32 = vsel %vm955_vm3, %v2313_v31, 0.0 }
 0x41c   : > { %1539 = vadd.xlane.f32.xlu0 %v1538_v32 }
 0x429   : > { %1545 = vrot.lane.b32.xlu1 %v2668_v50, %s2428_s21 }
 0x432   : > { %1377 = vrot.lane.b32.xlu0 %v2668_v50, %s2427_s20  ;;  %v1638_v50 = vld [vmem:[%s2883_s7 + $0x8] sm:$0xff] }
 0x433   : > { %2223 = vmatpush3.msra.mxu1 %v1638_v50 }
 0x434   : > { %2224 = vmatprep.subr.mxu1 %v2418_v4 }
 0x435   : > { %2225 = vmatpush3.msra.mxu1 %v1637_v52 }
 0x499   : > { %v1039_v34 = vpop.xlane.xlu1 %1038 }
 0x49a   : > { %2314 = vrcp.f32 %v1039_v34  ;;  %v2111_v34 = vld [vmem:[%s2890_s14] ss:$0 sm:$0xff] }
 0x49d   : > { %v1203_v35 = vpop.xlane.xlu0 %1202 }
 0x49e   : > { %2316 = vrcp.f32 %v1203_v35 }
 0x4a1   : > { %v1372_v36 = vpop.xlane.xlu1 %1371 }
 0x4a2   : > { %2318 = vrcp.f32 %v1372_v36 }
 0x4a5   : > { %v1540_v37 = vpop.xlane.xlu0 %1539  ;;  %v1546_v45 = vpop.permute.xlu1 %1545 }
 0x4a6   : > { %2320 = vrcp.f32 %v1540_v37 }
 0x4a7   : > { %v2315_v38 = vpop.eup %2314 }
 0x4a8   : > { %v1041_v39 = vmul.f32 %v2315_v38, %v2307_v25  ;;  %v1838_v25 = vld [vmem:[%s2889_s13 + $0x18] sm:$0xff] }
 0x4a9   : > { %v1378_v42 = vpop.permute.xlu0 %1377 }
 0x4aa   : > { %2186 = vmatmul.mubr.msk.f32.vlgmr.msra.gmra.mxu0 %vm955_vm3, %v1041_v39  ;;  %1042 = vst.msk [vmem:[%s2711_s24] sm:$0xff] %vm955_vm3, %v1041_v39 }
 0x4ab   : > { %v2317_v40 = vpop.eup %2316  ;;  %2194 = vmatpush3.msra.mxu0 %v1210_v33  ;;  %2195 = vmatprep.mubr.msk.f32.mxu0 %vm2422_vm1, %v2418_v4 }
 0x4ac   : > { %2203 = vmatprep.subr.mxu0 %v2418_v4  ;;  %v1205_v41 = vmul.f32 %v2317_v40, %v2309_v27  ;;  %v1836_v27 = vld [vmem:[%s2889_s13 + $0x8] sm:$0xff] }
 0x4ae   : > { %2196 = vmatmul.mubr.msk.f32.vlgmr.msra.gmra.mxu0 %vm955_vm3, %v1205_v41  ;;  %2095 = vst.msk [vmem:[%s2711_s24 + $0x8] sm:$0xff] %vm955_vm3, %v1205_v41 }
 0x4af   : > { %v2319_v43 = vpop.eup %2318  ;;  %2204 = vmatpush3.msra.mxu0 %v1378_v42  ;;  %2205 = vmatprep.mubr.msk.f32.mxu0 %vm2422_vm1, %v2418_v4 }
 0x4b0   : > { %2213 = vmatprep.subr.mxu0 %v2418_v4  ;;  %v1374_v44 = vmul.f32 %v2319_v43, %v2311_v29  ;;  %v2109_v29 = vld [vmem:[%s2888_s12] ss:$0 sm:$0xff] }
 0x4b2   : > { %2206 = vmatmul.mubr.msk.f32.vlgmr.msra.gmra.mxu0 %vm955_vm3, %v1374_v44  ;;  %2099 = vst.msk [vmem:[%s2711_s24 + $0x10] sm:$0xff] %vm955_vm3, %v1374_v44 }
 0x4b3   : > { %v2321_v46 = vpop.eup %2320  ;;  %2214 = vmatpush3.msra.mxu0 %v1546_v45  ;;  %2215 = vmatprep.mubr.msk.f32.mxu0 %vm2422_vm1, %v2418_v4 }
 0x4b4   : > { %v1542_v47 = vmul.f32 %v2321_v46, %v2313_v31  ;;  %2229 = vmatprep.subr.mxu0 %v2418_v4 }
 0x4b6   : > { %2216 = vmatmul.mubr.msk.f32.vlgmr.msra.gmra.mxu0 %vm955_vm3, %v1542_v47  ;;  %2103 = vst.msk [vmem:[%s2711_s24 + $0x18] sm:$0xff] %vm955_vm3, %v1542_v47 }
 0x4b7   : > { %2233 = vmatprep.mubr.msk.f32.mxu0 %vm2422_vm1, %v2418_v4  ;;  %2230 = vmatpush3.msra.mxu0 %v1753_v15 }
 0x4b8   : > { %2231 = vmatprep.subr.mxu0 %v2418_v4 }
 0x4b9   : > { %2232 = vmatpush3.msra.mxu0 %v1752_v16 }
 0x4ba   : > { %2236 = vmatprep.subr.mxu0 %v2418_v4 }
 0x56a   : > { %v1112_v51 = vpop.f32.mrf.mxu0 }
 0x56c   : > { %v2187_v53 = vpop.f32.mrf.mxu0 }
 0x56e   : > { %v1281_v54 = vpop.f32.mrf.mxu0 }
 0x56f   : > { %1622 = vrot.lane.b32.xlu1 %v1281_v54, %s2902_s23  ;;  %s2330_s23 = sshll.u32 %s2432_s1, 4  ;;  %s2331_s23 = int_to_ptr.vmem [resolvable:$false] %s2330_s23 }
 0x570   : > { %v2197_v55 = vpop.f32.mrf.mxu0 }
 0x572   : > { %v1449_v56 = vpop.f32.mrf.mxu0 }
 0x573   : > { %1626 = vrot.lane.b32.xlu0 %v1449_v56, %s2430_s25  ;;  %s1982_s25 = sshll.u32 %s2711_s24, 4  ;;  %s2332_s24 = scalar_lea.vmem %s2331_s23, 1024  ;;  %s2803_s25 = int_to_ptr.vmem [resolvable:$true] %s1982_s25 }
 0x574   : > { %v2207_v57 = vpop.f32.mrf.mxu0  ;;  %s2326_s29 = scalar_lea.vmem %s2803_s25, 512  ;;  %p2333_p0 = scmp.lt.s32.totalorder %s2803_s25, %s2331_s23 }
 0x575   : > { %p2327_p11 = scmp.ne.s32.totalorder %s2803_s25, %s2326_s29  ;;  %p2334_p1 = scmp.lt.s32.totalorder %s2332_s24, %s2326_s29 }
 0x576   : > { %v1617_v58 = vpop.f32.mrf.mxu0 }
 0x577   : > { %1630 = vrot.lane.b32.xlu1 %v1617_v58, %s2431_s27  ;;  %s2122_s27 = sshll.u32 %s2551_s0, 9  ;;  %p2328_p12 = pnand %p2327_p11, %p2568_p5 }
 0x578   : > { %v2217_v59 = vpop.f32.mrf.mxu0  ;;  %s2808_s20 = scalar_lea.hbm %s2894_s18, %s2122_s27  ;;  %p2335_p2 = por %p2334_p1, %p2333_p0 }
 0x579   : > { %p2329_p13 = pneg %p2328_p12 }
 0x57b   : > { %p2336_p3 = pnand %p2335_p2, %p2329_p13 }
 0x5e1   : > { %v1623_v60 = vpop.permute.xlu1 %1622 }
 0x5e2   : > { %v1633_v62 = vsel %vm955_vm3, %v1112_v51, %v1623_v60 }
 0x5e5   : > { %v1627_v61 = vpop.permute.xlu0 %1626 }
 0x5e6   : > { %v1634_v63 = vsel %vm591_vm0, %v1633_v62, %v1627_v61 }
 0x5e9   : > { %v1631_v0 = vpop.permute.xlu1 %1630 }
 0x5ea   : > { %v1636_v1 = vsel %vm1635_vm4, %v1634_v63, %v1631_v0 }
 0x5eb   : > { %2227 = vmatmul.mubr.msk.f32.vlgmr.msra.gmra.mxu1 %vm799_vm2, %v1636_v1 }
 0x6ab   : > { %v1717_v3 = vpop.f32.mrf.mxu1 }
 0x6ac   : > { %v1718_v5 = vadd.f32 %v2105_v2, %v1717_v3 }
 0x6ad   : > { %v2228_v6 = vpop.f32.mrf.mxu1 }
 0x6ae   : > { %v1721_v8 = vadd.f32 %v1718_v5, %v2603_v7 }
 0x6b0   : > { %v1722_v9 = vsel %vm591_vm0, %v1721_v8, 0.0 }
 0x6b1   : > { %1723 = vadd.xlane.f32.xlu0 %v1722_v9 }
 0x73a   : > { %v1724_v10 = vpop.xlane.xlu0 %1723 }
 0x73b   : > { %v1726_v11 = vmul.f32 0.0625, %v1724_v10 }
 0x73d   : > { %v1727_v12 = vsub.f32 %v1721_v8, %v1726_v11 }
 0x73f   : > { %v1728_v13 = vmul.f32 %v1727_v12, %v1727_v12 }
 0x741   : > { %v1729_v14 = vsel %vm591_vm0, %v1728_v13, 0.0 }
 0x742   : > { %1730 = vadd.xlane.f32.xlu1 %v1729_v14 }
 0x7cb   : > { %v1731_v7 = vpop.xlane.xlu1 %1730 }
 0x7cc   : > { %v1732_v17 = vmul.f32 0.0625, %v1731_v7 }
 0x7ce   : > { %v1733_v18 = vadd.f32 1e-05, %v1732_v17 }
 0x7d0   : > { %2322 = vrsqrt.f32 %v1733_v18 }
 0x7dd   : > { %v2323_v19 = vpop.eup %2322 }
 0x7de   : > { %v1735_v21 = vmul.f32 %v2323_v19, %v1727_v12 }
 0x7e0   : > { %v1743_v23 = vmul.f32 %v2107_v20, %v1735_v21 }
 0x7e2   : > { %v1751_v24 = vadd.f32 %v2108_v22, %v1743_v23 }
 0x7e4   : > { %2234 = vmatmul.mubr.msk.f32.vlgmr.msra.gmra.mxu0 %vm591_vm0, %v1751_v24 }
 0x7e5   : > { %2237 = vmatpush3.msra.mxu0 %v1838_v25  ;;  %2244 = vmatprep.mubr.msk.f32.mxu0 %vm2422_vm1, %v2418_v4 }
 0x7e6   : > { %2238 = vmatprep.subr.mxu0 %v2418_v4 }
 0x7e7   : > { %2239 = vmatpush3.msra.mxu0 %v1837_v26 }
 0x7e8   : > { %2240 = vmatprep.subr.mxu0 %v2418_v4 }
 0x7e9   : > { %2241 = vmatpush3.msra.mxu0 %v1836_v27 }
 0x7ea   : > { %2242 = vmatprep.subr.mxu0 %v2418_v4 }
 0x7eb   : > { %2243 = vmatpush3.msra.mxu0 %v1835_v28 }
 0x8a4   : > { %v1830_v30 = vpop.f32.mrf.mxu0 }
 0x8a5   : > { %v1831_v31 = vadd.f32 %v2109_v29, %v1830_v30 }
 0x8a6   : > { %v2235_v32 = vpop.f32.mrf.mxu0 }
 0x8a7   : > { %v1834_v33 = vmax.f32 %v1831_v31, 0.0 }
 0x8a9   : > { %2245 = vmatmul.mubr.msk.f32.vlgmr.msra.gmra.mxu0 %vm799_vm2, %v1834_v33 }
 0x969   : > { %v1915_v35 = vpop.f32.mrf.mxu0 }
 0x96a   : > { %v1916_v4 = vadd.f32 %v2111_v34, %v1915_v35 }
 0x96b   : > { %v2246_v36 = vpop.f32.mrf.mxu0 }
 0x96c   : > { %v1919_v37 = vadd.f32 %v1916_v4, %v1751_v24 }
 0x96e   : > { %v1920_v38 = vsel %vm591_vm0, %v1919_v37, 0.0 }
 0x96f   : > { %1921 = vadd.xlane.f32.xlu0 %v1920_v38 }
 0x9f8   : > { %v1922_v39 = vpop.xlane.xlu0 %1921 }
 0x9f9   : > { %v1923_v40 = vmul.f32 0.0625, %v1922_v39 }
 0x9fb   : > { %v1924_v41 = vsub.f32 %v1919_v37, %v1923_v40 }
 0x9fd   : > { %v1925_v42 = vmul.f32 %v1924_v41, %v1924_v41 }
 0x9ff   : > { %v1926_v43 = vsel %vm591_vm0, %v1925_v42, 0.0 }
 0xa00   : > { %1927 = vadd.xlane.f32.xlu0 %v1926_v43 }
 0xa01   : > { %2339 = shalt.err (!%p2336_p3)
}
 0xa02   : > { %s2340_s27 = scalar_lea.hbm %s2808_s20, 512  ;;  %s2344_s1 = scalar_lea.hbm %s2894_s18, 1024 }
 0xa03   : > { %p2341_p4 = scmp.ne.s32.totalorder %s2808_s20, %s2340_s27  ;;  %p2345_p9 = scmp.lt.s32.totalorder %s2808_s20, %s2894_s18 }
 0xa04   : > { %p2346_p10 = scmp.lt.s32.totalorder %s2344_s1, %s2340_s27 }
 0xa05   : > { %p2342_p7 = pnand %p2341_p4, %p2568_p5 }
 0xa06   : > { %p2347_p11 = por %p2346_p10, %p2345_p9 }
 0xa07   : > { %p2343_p8 = pneg %p2342_p7 }
 0xa09   : > { %p2348_p12 = pnand %p2347_p11, %p2343_p8 }
 0xa0b   : > { %2351 = shalt.err (!%p2348_p12)
}
 0xa0c   : > { %s2433_s23 = smov 128   ;;  %s2921_s29 = smov 8   ;;  %v2113_v48 = vld [vmem:[%s2891_s15] ss:$0 sm:$0xff] }
 0xa0d   : > { %s2922_s24 = scalar_lea.sflag [#allocation5], %s2707_s30  ;;  %s2080_s3 = sshll.u32 %s2707_s30, 3  ;;  %v2114_v50 = vld [vmem:[%s2892_s16] ss:$0 sm:$0xff] }
 0xa0e   : > { %2248 = dma.vmem_to_hbm [thread:$0]  (%p2568_p5), %s2803_s25, 512, %s2808_s20, %s2922_s24, %s2433_s23, %s2433_s23, %s2921_s29  }
 0xa0f   : > { %s2117_s1 = sshll.u32 %s2551_s0, 7  ;;  %s570_s4 = scalar_lea.vmem [#allocation2], %s2080_s3 }
 0xa10   : > { %s1969_s25 = sshll.u32 %s570_s4, 4  ;;  %s1967_s29 = scalar_lea.hbm %s2893_s17, %s2117_s1  ;;  %s1970_s25 = int_to_ptr.vmem [resolvable:$true] %s1969_s25 }
 0xa11   : > { %s1951_s24 = scalar_lea.sflag [#allocation3], %s2707_s30  ;;  %s2352_s21 = scalar_lea.vmem %s1970_s25, 128 }
 0xa12   : > { %p2353_p13 = scmp.ne.s32.totalorder %s1970_s25, %s2352_s21  ;;  %s2434_s27 = smov [#allocation2]  }
 0xa13   : > { %s2356_s22 = sshll.u32 %s2434_s27, 4  ;;  %s2357_s22 = int_to_ptr.vmem [resolvable:$false] %s2356_s22 }
 0xa14   : > { %p2354_p0 = pnand %p2353_p13, %p2568_p5  ;;  %s2358_s0 = scalar_lea.vmem %s2357_s22, 256 }
 0xa15   : > { %p2359_p2 = scmp.lt.s32.totalorder %s1970_s25, %s2357_s22  ;;  %p2360_p3 = scmp.lt.s32.totalorder %s2358_s0, %s2352_s21 }
 0xa16   : > { %p2355_p1 = pneg %p2354_p0 }
 0xa17   : > { %p2361_p4 = por %p2360_p3, %p2359_p2 }
 0xa19   : > { %p2362_p7 = pnand %p2361_p4, %p2355_p1 }
 0xa89   : > { %v1928_v44 = vpop.xlane.xlu0 %1927 }
 0xa8a   : > { %v1929_v45 = vmul.f32 0.0625, %v1928_v44 }
 0xa8c   : > { %v1930_v46 = vadd.f32 1e-05, %v1929_v45 }
 0xa8e   : > { %2324 = vrsqrt.f32 %v1930_v46 }
 0xa9b   : > { %v2325_v47 = vpop.eup %2324 }
 0xa9c   : > { %v1932_v49 = vmul.f32 %v2325_v47, %v1924_v41 }
 0xa9e   : > { %v1940_v51 = vmul.f32 %v2113_v48, %v1932_v49 }
 0xaa0   : > { %v1948_v52 = vadd.f32 %v2114_v50, %v1940_v51 }
 0xaa2   : > { %1949 = vst.msk [vmem:[%s570_s4] sm:$0xff] %vm591_vm0, %v1948_v52 }
 0xaa3   : > { %2365 = shalt.err (!%p2362_p7)
}
 0xaa4   : > { %s2366_s3 = scalar_lea.hbm %s1967_s29, 128  ;;  %s2370_s19 = scalar_lea.hbm %s2893_s17, 256 }
 0xaa5   : > { %p2367_p8 = scmp.ne.s32.totalorder %s1967_s29, %s2366_s3  ;;  %p2371_p11 = scmp.lt.s32.totalorder %s1967_s29, %s2893_s17 }
 0xaa6   : > { %p2372_p12 = scmp.lt.s32.totalorder %s2370_s19, %s2366_s3 }
 0xaa7   : > { %p2368_p9 = pnand %p2367_p8, %p2568_p5 }
 0xaa8   : > { %p2373_p13 = por %p2372_p12, %p2371_p11 }
 0xaa9   : > { %p2369_p10 = pneg %p2368_p9 }
 0xaab   : > { %p2374_p0 = pnand %p2373_p13, %p2369_p10 }
 0xaad   : > { %2377 = shalt.err (!%p2374_p0)
}
 0xaae   : > { %2247 = dma.vmem_to_hbm [thread:$0]  (%p2568_p5), %s1970_s25, 128, %s1967_s29, %s1951_s24  }
 0xaaf PF: > { %s2923_s23 = sld [smem:[#allocation10_spill]] }
 0xab0   : > { %s2924_s21 = sld [smem:[#allocation8_spill]] }
 0xab5   : > { %p2258_p1 = scmp.ge.s32.totalorder %s2923_s23, 2 }
 0xab6   : > { %s1997_s22 = sand.u32 1, %s2924_s21  }
 0xab7   : > { %p2252_p2 = pnand %p2258_p1, %p2572_p6  ;;  %s1998_s0 = scalar_lea.sflag [#allocation3], %s1997_s22 }
 0xab9   : > { %p2253_p3 = pneg %p2252_p2 }
 0xabb   : > { %2395 = dma.done.wait (%p2253_p3), %s1998_s0, 128  }
 0xabc   : > { %2397 = vsyncadd (%p2253_p3), %s1998_s0, 4294967168  ;;  %s2007_s4 = scalar_lea.sflag [#allocation5], %s1997_s22 }
 0xabd   : > { %2399 = dma.done.wait (%p2253_p3), %s2007_s4, 512  }
 0xabe   : > { %2401 = vsyncadd (%p2253_p3), %s2007_s4, 4294966784  ;;  %s2926_s30 = sld [smem:[#allocation11_spill]]  ;;  %s2929_s27 = smov %s2408_s28 }
 0xabf   : > { %s2927_s3 = sld [smem:[#allocation9_spill]] }
 0xac0   : > { %s2928_s29 = sld [smem:[#allocation12_spill]] }
 0xac4   : > { %p32_p5 = scmp.ge.s32.totalorder %s2926_s30, 4  }
 0xac5   : > { %s2930_s28 = smov %s2927_s3 }
 0xac6   :  { %34 = sbr.rel (!%p32_p5) target bundleno = 11 (0xb), region = 143 }
 0xacb   :  { %2012 = vsyncpa [#allocation3], 1 }
 0xacc   :  { %2014 = vsyncpa [#allocation3 + $0x1], 1 }
 0xacd   :  { %2015 = vsyncpa [#allocation5], 1 }
 0xace   :  { %2017 = vsyncpa [#allocation5 + $0x1], 1 }

</bundles_post_ra>
